<compile_context>
chip_gen: v5e
topology: v5e:2x2
jax: 0.10.0
libtpu: 0.0.40
codegen_flags: <defaults>
</compile_context>

<pallas_src>
import functools

import jax
import jax.numpy as jnp
from jax.experimental import pallas as pl
from jax.experimental.pallas import tpu as pltpu

HIDDEN = 768
PROJ = 128
NUM_LABELS = 6  # len(label_map) in the original file


def _round_up(x, m):
    return ((x + m - 1) // m) * m


def ymodel_kernel(x1_ref, x2_ref, x3_ref,
                  w1_ref, b1_ref, w2_ref, b2_ref, w3_ref, b3_ref,
                  wf_ref, bf_ref, lbl_ref,
                  logits_ref, nll_ref, *, batch_size, tile_b):
    # tanh(fc_i(cls_i)) -- bf16 MXU matmuls with f32 accumulation.
    o1 = jnp.tanh(jnp.dot(x1_ref[...], w1_ref[...],
                          preferred_element_type=jnp.float32) + b1_ref[...])
    o2 = jnp.tanh(jnp.dot(x2_ref[...], w2_ref[...],
                          preferred_element_type=jnp.float32) + b2_ref[...])
    o3 = jnp.tanh(jnp.dot(x3_ref[...], w3_ref[...],
                          preferred_element_type=jnp.float32) + b3_ref[...])

    # concat(o1, o2, o3) @ Wf  ==  o1 @ Wf[:128] + o2 @ Wf[128:256] + o3 @ Wf[256:]
    logits = (jnp.dot(o1.astype(jnp.bfloat16), wf_ref[0:PROJ, :],
                      preferred_element_type=jnp.float32)
              + jnp.dot(o2.astype(jnp.bfloat16), wf_ref[PROJ:2 * PROJ, :],
                        preferred_element_type=jnp.float32)
              + jnp.dot(o3.astype(jnp.bfloat16), wf_ref[2 * PROJ:3 * PROJ, :],
                        preferred_element_type=jnp.float32)
              + bf_ref[...])
    logits_ref[...] = logits

    # Numerically stable log-softmax + NLL; one-hot built in-kernel from int32
    # labels (no (B, num_labels) one-hot DMA from HBM).
    m = jnp.max(logits, axis=-1, keepdims=True)
    z = logits - m
    lse = jnp.log(jnp.sum(jnp.exp(z), axis=-1, keepdims=True))
    logp = z - lse
    col = jax.lax.broadcasted_iota(jnp.int32, (tile_b, NUM_LABELS), 1)
    onehot = (col == lbl_ref[...]).astype(jnp.float32)
    nll = -jnp.sum(onehot * logp, axis=-1, keepdims=True)          # (tile_b, 1)

    # Mask batch-padding rows so the wrapper-side mean over the true B is exact.
    row = (jax.lax.broadcasted_iota(jnp.int32, (tile_b, 1), 0)
           + pl.program_id(0) * tile_b)
    valid = (row < batch_size).astype(jnp.float32)
    nll_ref[...] = nll * valid


def ymodel_head_forward(cls1, cls2, cls3, params, labels, *, tile_b=256):
    """Pallas-call wrapper. Returns (loss, logits) like YModel.forward."""
    B = cls1.shape[0]
    # Tile along batch; multiple of 8 (sublane). Small batches -> single tile.
    tile_b = min(tile_b, _round_up(B, 8))
    Bp = _round_up(B, tile_b)
    num_tiles = Bp // tile_b
    pad = Bp - B

    def prep_x(x):
        return jnp.pad(x.astype(jnp.bfloat16), ((0, pad), (0, 0)))

    x1, x2, x3 = prep_x(cls1), prep_x(cls2), prep_x(cls3)
    lbl = jnp.pad(labels.astype(jnp.int32), (0, pad)).reshape(Bp, 1)

    # bf16 weights (halves the dominant weight-DMA bytes); biases stay f32 and
    # are added after the f32-accumulated matmul.
    bt = jnp.bfloat16
    w1, w2, w3 = params["w1"].astype(bt), params["w2"].astype(bt), params["w3"].astype(bt)
    wf = params["wf"].astype(bt)
    b1, b2, b3, bf = params["b1"], params["b2"], params["b3"], params["bf"]

    x_spec = pl.BlockSpec((tile_b, HIDDEN), lambda i: (i, 0))
    lbl_spec = pl.BlockSpec((tile_b, 1), lambda i: (i, 0))
    # Weight/bias blocks: constant index_map -> stay resident in VMEM across tiles.
    w_spec = pl.BlockSpec((HIDDEN, PROJ), lambda i: (0, 0))
    b_spec = pl.BlockSpec((1, PROJ), lambda i: (0, 0))
    wf_spec = pl.BlockSpec((3 * PROJ, NUM_LABELS), lambda i: (0, 0))
    bf_spec = pl.BlockSpec((1, NUM_LABELS), lambda i: (0, 0))

    kernel = functools.partial(ymodel_kernel, batch_size=B, tile_b=tile_b)

    logits_p, nll_rows = pl.pallas_call(
        kernel,
        grid=(num_tiles,),
        out_shape=(jax.ShapeDtypeStruct((Bp, NUM_LABELS), jnp.float32),
                   jax.ShapeDtypeStruct((Bp, 1), jnp.float32)),
        in_specs=[x_spec, x_spec, x_spec,
                  w_spec, b_spec, w_spec, b_spec, w_spec, b_spec,
                  wf_spec, bf_spec, lbl_spec],
        out_specs=(pl.BlockSpec((tile_b, NUM_LABELS), lambda i: (i, 0)),
                   pl.BlockSpec((tile_b, 1), lambda i: (i, 0))),
        compiler_params=pltpu.CompilerParams(
            dimension_semantics=("parallel",)),
    )(x1, x2, x3, w1, b1, w2, b2, w3, b3, wf, bf, lbl)

    logits = logits_p[:B]
    loss = jnp.sum(nll_rows) / B          # padded rows already masked to 0
    return loss, logits


def init_params(key):
    ks = jax.random.split(key, 8)
    scale_in = 1.0 / jnp.sqrt(HIDDEN)
    scale_cat = 1.0 / jnp.sqrt(3 * PROJ)
    return {
        "w1": jax.random.uniform(ks[0], (HIDDEN, PROJ), jnp.float32, -scale_in, scale_in),
        "b1": jax.random.uniform(ks[1], (1, PROJ), jnp.float32, -scale_in, scale_in),
        "w2": jax.random.uniform(ks[2], (HIDDEN, PROJ), jnp.float32, -scale_in, scale_in),
        "b2": jax.random.uniform(ks[3], (1, PROJ), jnp.float32, -scale_in, scale_in),
        "w3": jax.random.uniform(ks[4], (HIDDEN, PROJ), jnp.float32, -scale_in, scale_in),
        "b3": jax.random.uniform(ks[5], (1, PROJ), jnp.float32, -scale_in, scale_in),
        "wf": jax.random.uniform(ks[6], (3 * PROJ, NUM_LABELS), jnp.float32, -scale_cat, scale_cat),
        "bf": jax.random.uniform(ks[7], (1, NUM_LABELS), jnp.float32, -scale_cat, scale_cat),
    }


def _ref_forward(c1, c2, c3, p, lbls):
    """Pure-JAX reference of the head with the same bf16 weight cast."""
    bt = jnp.bfloat16
    o1 = jnp.tanh(jnp.dot(c1.astype(bt), p["w1"].astype(bt),
                          preferred_element_type=jnp.float32) + p["b1"])
    o2 = jnp.tanh(jnp.dot(c2.astype(bt), p["w2"].astype(bt),
                          preferred_element_type=jnp.float32) + p["b2"])
    o3 = jnp.tanh(jnp.dot(c3.astype(bt), p["w3"].astype(bt),
                          preferred_element_type=jnp.float32) + p["b3"])
    cat = jnp.concatenate([o1, o2, o3], axis=1).astype(bt)
    lg = jnp.dot(cat, p["wf"].astype(bt), preferred_element_type=jnp.float32) + p["bf"]
    logp = jax.nn.log_softmax(lg, axis=-1)
    nll = -jnp.take_along_axis(logp, lbls[:, None], axis=1)[:, 0]
    return jnp.mean(nll), lg


if __name__ == "__main__":
    key = jax.random.PRNGKey(0)
    kp, k1, k2, k3, kl = jax.random.split(key, 5)

    B, S = 2, 8
    params = init_params(kp)

    # Synthetic BERT sequence outputs [B, S, 768]; head uses the [CLS] token (index 0).
    bert_out_1 = jax.random.normal(k1, (B, S, HIDDEN), jnp.float32)
    bert_out_2 = jax.random.normal(k2, (B, S, HIDDEN), jnp.float32)
    bert_out_3 = jax.random.normal(k3, (B, S, HIDDEN), jnp.float32)
    cls1 = bert_out_1[:, 0]
    cls2 = bert_out_2[:, 0]
    cls3 = bert_out_3[:, 0]

    labels = jax.random.randint(kl, (B,), 0, NUM_LABELS)

    loss, logits = ymodel_head_forward(cls1, cls2, cls3, params, labels)
    jax.block_until_ready((loss, logits))

    assert logits.shape == (B, NUM_LABELS)
    assert bool(jnp.isfinite(loss))

    ref_loss, ref_logits = _ref_forward(cls1, cls2, cls3, params, labels)
    assert jnp.allclose(logits, ref_logits, rtol=5e-2, atol=5e-2)
    assert jnp.allclose(loss, ref_loss, rtol=5e-2, atol=5e-2)

    print("KERNEL_OK")
</pallas_src>

<mosaic_0001>
module attributes {stable_mosaic.version = 11 : i64} {
  func.func @ymodel_kernel(%arg0: i32, %arg1: memref<8x768xbf16, #tpu.memory_space<vmem>>, %arg2: memref<8x768xbf16, #tpu.memory_space<vmem>>, %arg3: memref<8x768xbf16, #tpu.memory_space<vmem>>, %arg4: memref<768x128xbf16, #tpu.memory_space<vmem>>, %arg5: memref<1x128xf32, #tpu.memory_space<vmem>>, %arg6: memref<768x128xbf16, #tpu.memory_space<vmem>>, %arg7: memref<1x128xf32, #tpu.memory_space<vmem>>, %arg8: memref<768x128xbf16, #tpu.memory_space<vmem>>, %arg9: memref<1x128xf32, #tpu.memory_space<vmem>>, %arg10: memref<384x6xbf16, #tpu.memory_space<vmem>>, %arg11: memref<1x6xf32, #tpu.memory_space<vmem>>, %arg12: memref<8x1xi32, #tpu.memory_space<vmem>>, %arg13: memref<8x6xf32, #tpu.memory_space<vmem>>, %arg14: memref<8x1xf32, #tpu.memory_space<vmem>>) attributes {dimension_semantics = [#tpu.dimension_semantics<parallel>], iteration_bounds = array<i64: 1>, scalar_prefetch = 0 : i64, scratch_operands = 0 : i64, tpu.core_type = #tpu.core_type<tc>, window_params = [{transform_indices = @transform_0, window_bounds = array<i64: 8, 768>}, {transform_indices = @transform_1, window_bounds = array<i64: 8, 768>}, {transform_indices = @transform_2, window_bounds = array<i64: 8, 768>}, {pipeline_mode = #tpu.pipeline_mode<synchronous>, transform_indices = @transform_3, window_bounds = array<i64: 768, 128>}, {pipeline_mode = #tpu.pipeline_mode<synchronous>, transform_indices = @transform_4, window_bounds = array<i64: 1, 128>}, {pipeline_mode = #tpu.pipeline_mode<synchronous>, transform_indices = @transform_5, window_bounds = array<i64: 768, 128>}, {pipeline_mode = #tpu.pipeline_mode<synchronous>, transform_indices = @transform_6, window_bounds = array<i64: 1, 128>}, {pipeline_mode = #tpu.pipeline_mode<synchronous>, transform_indices = @transform_7, window_bounds = array<i64: 768, 128>}, {pipeline_mode = #tpu.pipeline_mode<synchronous>, transform_indices = @transform_8, window_bounds = array<i64: 1, 128>}, {pipeline_mode = #tpu.pipeline_mode<synchronous>, transform_indices = @transform_9, window_bounds = array<i64: 384, 6>}, {pipeline_mode = #tpu.pipeline_mode<synchronous>, transform_indices = @transform_10, window_bounds = array<i64: 1, 6>}, {transform_indices = @transform_11, window_bounds = array<i64: 8, 1>}, {transform_indices = @transform_12, window_bounds = array<i64: 8, 6>}, {transform_indices = @transform_13, window_bounds = array<i64: 8, 1>}]} {
    %c0 = arith.constant 0 : index
    %c0_0 = arith.constant 0 : index
    %0 = vector.load %arg1[%c0, %c0_0] : memref<8x768xbf16, #tpu.memory_space<vmem>>, vector<8x768xbf16>
    %c0_1 = arith.constant 0 : index
    %c0_2 = arith.constant 0 : index
    %1 = vector.load %arg4[%c0_1, %c0_2] : memref<768x128xbf16, #tpu.memory_space<vmem>>, vector<768x128xbf16>
    %cst = arith.constant dense<0.000000e+00> : vector<8x128xf32>
    %2 = tpu.matmul %0, %1, %cst {dimension_numbers = #tpu.dot_dimension_numbers<[1], [0], [0], [1], [0, 0, 1, 1], [], []>} : vector<8x768xbf16>, vector<768x128xbf16>, vector<8x128xf32> -> vector<8x128xf32>
    %c0_3 = arith.constant 0 : index
    %c0_4 = arith.constant 0 : index
    %3 = vector.load %arg5[%c0_3, %c0_4] : memref<1x128xf32, #tpu.memory_space<vmem>>, vector<1x128xf32>
    %4 = vector.broadcast %3 : vector<1x128xf32> to vector<8x128xf32>
    %5 = arith.addf %2, %4 : vector<8x128xf32>
    %6 = math.tanh %5 : vector<8x128xf32>
    %c0_5 = arith.constant 0 : index
    %c0_6 = arith.constant 0 : index
    %7 = vector.load %arg2[%c0_5, %c0_6] : memref<8x768xbf16, #tpu.memory_space<vmem>>, vector<8x768xbf16>
    %c0_7 = arith.constant 0 : index
    %c0_8 = arith.constant 0 : index
    %8 = vector.load %arg6[%c0_7, %c0_8] : memref<768x128xbf16, #tpu.memory_space<vmem>>, vector<768x128xbf16>
    %cst_9 = arith.constant dense<0.000000e+00> : vector<8x128xf32>
    %9 = tpu.matmul %7, %8, %cst_9 {dimension_numbers = #tpu.dot_dimension_numbers<[1], [0], [0], [1], [0, 0, 1, 1], [], []>} : vector<8x768xbf16>, vector<768x128xbf16>, vector<8x128xf32> -> vector<8x128xf32>
    %c0_10 = arith.constant 0 : index
    %c0_11 = arith.constant 0 : index
    %10 = vector.load %arg7[%c0_10, %c0_11] : memref<1x128xf32, #tpu.memory_space<vmem>>, vector<1x128xf32>
    %11 = vector.broadcast %10 : vector<1x128xf32> to vector<8x128xf32>
    %12 = arith.addf %9, %11 : vector<8x128xf32>
    %13 = math.tanh %12 : vector<8x128xf32>
    %c0_12 = arith.constant 0 : index
    %c0_13 = arith.constant 0 : index
    %14 = vector.load %arg3[%c0_12, %c0_13] : memref<8x768xbf16, #tpu.memory_space<vmem>>, vector<8x768xbf16>
    %c0_14 = arith.constant 0 : index
    %c0_15 = arith.constant 0 : index
    %15 = vector.load %arg8[%c0_14, %c0_15] : memref<768x128xbf16, #tpu.memory_space<vmem>>, vector<768x128xbf16>
    %cst_16 = arith.constant dense<0.000000e+00> : vector<8x128xf32>
    %16 = tpu.matmul %14, %15, %cst_16 {dimension_numbers = #tpu.dot_dimension_numbers<[1], [0], [0], [1], [0, 0, 1, 1], [], []>} : vector<8x768xbf16>, vector<768x128xbf16>, vector<8x128xf32> -> vector<8x128xf32>
    %c0_17 = arith.constant 0 : index
    %c0_18 = arith.constant 0 : index
    %17 = vector.load %arg9[%c0_17, %c0_18] : memref<1x128xf32, #tpu.memory_space<vmem>>, vector<1x128xf32>
    %18 = vector.broadcast %17 : vector<1x128xf32> to vector<8x128xf32>
    %19 = arith.addf %16, %18 : vector<8x128xf32>
    %20 = math.tanh %19 : vector<8x128xf32>
    %21 = arith.truncf %6 : vector<8x128xf32> to vector<8x128xbf16>
    %c0_19 = arith.constant 0 : index
    %c0_20 = arith.constant 0 : index
    %22 = vector.load %arg10[%c0_19, %c0_20] : memref<384x6xbf16, #tpu.memory_space<vmem>>, vector<128x6xbf16>
    %cst_21 = arith.constant dense<0.000000e+00> : vector<8x6xf32>
    %23 = tpu.matmul %21, %22, %cst_21 {dimension_numbers = #tpu.dot_dimension_numbers<[1], [0], [0], [1], [0, 0, 1, 1], [], []>} : vector<8x128xbf16>, vector<128x6xbf16>, vector<8x6xf32> -> vector<8x6xf32>
    %24 = arith.truncf %13 : vector<8x128xf32> to vector<8x128xbf16>
    %c128 = arith.constant 128 : index
    %c0_22 = arith.constant 0 : index
    %25 = vector.load %arg10[%c128, %c0_22] : memref<384x6xbf16, #tpu.memory_space<vmem>>, vector<128x6xbf16>
    %cst_23 = arith.constant dense<0.000000e+00> : vector<8x6xf32>
    %26 = tpu.matmul %24, %25, %cst_23 {dimension_numbers = #tpu.dot_dimension_numbers<[1], [0], [0], [1], [0, 0, 1, 1], [], []>} : vector<8x128xbf16>, vector<128x6xbf16>, vector<8x6xf32> -> vector<8x6xf32>
    %27 = arith.addf %23, %26 : vector<8x6xf32>
    %28 = arith.truncf %20 : vector<8x128xf32> to vector<8x128xbf16>
    %c256 = arith.constant 256 : index
    %c0_24 = arith.constant 0 : index
    %29 = vector.load %arg10[%c256, %c0_24] : memref<384x6xbf16, #tpu.memory_space<vmem>>, vector<128x6xbf16>
    %cst_25 = arith.constant dense<0.000000e+00> : vector<8x6xf32>
    %30 = tpu.matmul %28, %29, %cst_25 {dimension_numbers = #tpu.dot_dimension_numbers<[1], [0], [0], [1], [0, 0, 1, 1], [], []>} : vector<8x128xbf16>, vector<128x6xbf16>, vector<8x6xf32> -> vector<8x6xf32>
    %31 = arith.addf %27, %30 : vector<8x6xf32>
    %c0_26 = arith.constant 0 : index
    %c0_27 = arith.constant 0 : index
    %32 = vector.load %arg11[%c0_26, %c0_27] : memref<1x6xf32, #tpu.memory_space<vmem>>, vector<1x6xf32>
    %33 = vector.broadcast %32 : vector<1x6xf32> to vector<8x6xf32>
    %34 = arith.addf %31, %33 : vector<8x6xf32>
    %c0_28 = arith.constant 0 : index
    %c0_29 = arith.constant 0 : index
    %35 = vector.load %arg13[%c0_28, %c0_29] : memref<8x6xf32, #tpu.memory_space<vmem>>, vector<8x6xf32>
    tpu.vector_store %arg13[%c0_28, %c0_29], %34 {strides = array<i32>} : memref<8x6xf32, #tpu.memory_space<vmem>>, vector<8x6xf32>,
    %cst_30 = arith.constant dense<0xFF800000> : vector<8xf32>
    %36 = vector.multi_reduction <maximumf>, %34, %cst_30 [1] : vector<8x6xf32> to vector<8xf32>
    %37 = vector.shape_cast %36 : vector<8xf32> to vector<8x1xf32>
    %38 = vector.broadcast %37 : vector<8x1xf32> to vector<8x6xf32>
    %39 = arith.subf %34, %38 : vector<8x6xf32>
    %40 = math.exp %39 : vector<8x6xf32>
    %cst_31 = arith.constant dense<0.000000e+00> : vector<8xf32>
    %41 = vector.multi_reduction <add>, %40, %cst_31 [1] : vector<8x6xf32> to vector<8xf32>
    %42 = vector.shape_cast %41 : vector<8xf32> to vector<8x1xf32>
    %43 = math.log %42 : vector<8x1xf32>
    %44 = vector.broadcast %43 : vector<8x1xf32> to vector<8x6xf32>
    %45 = arith.subf %39, %44 : vector<8x6xf32>
    %46 = tpu.iota {dimensions = array<i32: 1>} : vector<8x6xi32>
    %c0_32 = arith.constant 0 : index
    %c0_33 = arith.constant 0 : index
    %47 = vector.load %arg12[%c0_32, %c0_33] : memref<8x1xi32, #tpu.memory_space<vmem>>, vector<8x1xi32>
    %48 = vector.broadcast %47 : vector<8x1xi32> to vector<8x6xi32>
    %49 = arith.cmpi eq, %46, %48 : vector<8x6xi32>
    %50 = arith.extui %49 : vector<8x6xi1> to vector<8x6xi32>
    %51 = arith.sitofp %50 : vector<8x6xi32> to vector<8x6xf32>
    %52 = arith.mulf %51, %45 : vector<8x6xf32>
    %cst_34 = arith.constant dense<0.000000e+00> : vector<8xf32>
    %53 = vector.multi_reduction <add>, %52, %cst_34 [1] : vector<8x6xf32> to vector<8xf32>
    %54 = vector.shape_cast %53 : vector<8xf32> to vector<8x1xf32>
    %cst_35 = arith.constant 0.000000e+00 : f32
    %55 = vector.broadcast %cst_35 : f32 to vector<8x1xf32>
    %56 = arith.subf %55, %54 : vector<8x1xf32>
    %57 = tpu.iota {dimensions = array<i32: 0>} : vector<8x1xi32>
    %c8_i32 = arith.constant 8 : i32
    %58 = arith.muli %arg0, %c8_i32 : i32
    %59 = vector.broadcast %58 : i32 to vector<8x1xi32>
    %60 = arith.addi %57, %59 : vector<8x1xi32>
    %c2_i32 = arith.constant 2 : i32
    %61 = vector.broadcast %c2_i32 : i32 to vector<8x1xi32>
    %62 = arith.cmpi slt, %60, %61 : vector<8x1xi32>
    %63 = arith.extui %62 : vector<8x1xi1> to vector<8x1xi32>
    %64 = arith.sitofp %63 : vector<8x1xi32> to vector<8x1xf32>
    %65 = arith.mulf %56, %64 : vector<8x1xf32>
    %c0_36 = arith.constant 0 : index
    %c0_37 = arith.constant 0 : index
    %66 = vector.load %arg14[%c0_36, %c0_37] : memref<8x1xf32, #tpu.memory_space<vmem>>, vector<8x1xf32>
    tpu.vector_store %arg14[%c0_36, %c0_37], %65 {strides = array<i32>} : memref<8x1xf32, #tpu.memory_space<vmem>>, vector<8x1xf32>,
    return
  }
  func.func @transform_0(%arg0: i32) -> (i32, i32) {
    %c0_i32 = arith.constant 0 : i32
    %c0_i32_0 = arith.constant 0 : i32
    return %arg0, %c0_i32 : i32, i32
  }
  func.func @transform_1(%arg0: i32) -> (i32, i32) {
    %c0_i32 = arith.constant 0 : i32
    %c0_i32_0 = arith.constant 0 : i32
    return %arg0, %c0_i32 : i32, i32
  }
  func.func @transform_2(%arg0: i32) -> (i32, i32) {
    %c0_i32 = arith.constant 0 : i32
    %c0_i32_0 = arith.constant 0 : i32
    return %arg0, %c0_i32 : i32, i32
  }
  func.func @transform_3(%arg0: i32) -> (i32, i32) {
    %c0_i32 = arith.constant 0 : i32
    %c0_i32_0 = arith.constant 0 : i32
    %c0_i32_1 = arith.constant 0 : i32
    return %c0_i32, %c0_i32_0 : i32, i32
  }
  func.func @transform_4(%arg0: i32) -> (i32, i32) {
    %c0_i32 = arith.constant 0 : i32
    %c0_i32_0 = arith.constant 0 : i32
    %c0_i32_1 = arith.constant 0 : i32
    return %c0_i32, %c0_i32_0 : i32, i32
  }
  func.func @transform_5(%arg0: i32) -> (i32, i32) {
    %c0_i32 = arith.constant 0 : i32
    %c0_i32_0 = arith.constant 0 : i32
    %c0_i32_1 = arith.constant 0 : i32
    return %c0_i32, %c0_i32_0 : i32, i32
  }
  func.func @transform_6(%arg0: i32) -> (i32, i32) {
    %c0_i32 = arith.constant 0 : i32
    %c0_i32_0 = arith.constant 0 : i32
    %c0_i32_1 = arith.constant 0 : i32
    return %c0_i32, %c0_i32_0 : i32, i32
  }
  func.func @transform_7(%arg0: i32) -> (i32, i32) {
    %c0_i32 = arith.constant 0 : i32
    %c0_i32_0 = arith.constant 0 : i32
    %c0_i32_1 = arith.constant 0 : i32
    return %c0_i32, %c0_i32_0 : i32, i32
  }
  func.func @transform_8(%arg0: i32) -> (i32, i32) {
    %c0_i32 = arith.constant 0 : i32
    %c0_i32_0 = arith.constant 0 : i32
    %c0_i32_1 = arith.constant 0 : i32
    return %c0_i32, %c0_i32_0 : i32, i32
  }
  func.func @transform_9(%arg0: i32) -> (i32, i32) {
    %c0_i32 = arith.constant 0 : i32
    %c0_i32_0 = arith.constant 0 : i32
    %c0_i32_1 = arith.constant 0 : i32
    return %c0_i32, %c0_i32_0 : i32, i32
  }
  func.func @transform_10(%arg0: i32) -> (i32, i32) {
    %c0_i32 = arith.constant 0 : i32
    %c0_i32_0 = arith.constant 0 : i32
    %c0_i32_1 = arith.constant 0 : i32
    return %c0_i32, %c0_i32_0 : i32, i32
  }
  func.func @transform_11(%arg0: i32) -> (i32, i32) {
    %c0_i32 = arith.constant 0 : i32
    %c0_i32_0 = arith.constant 0 : i32
    return %arg0, %c0_i32 : i32, i32
  }
  func.func @transform_12(%arg0: i32) -> (i32, i32) {
    %c0_i32 = arith.constant 0 : i32
    %c0_i32_0 = arith.constant 0 : i32
    return %arg0, %c0_i32 : i32, i32
  }
  func.func @transform_13(%arg0: i32) -> (i32, i32) {
    %c0_i32 = arith.constant 0 : i32
    %c0_i32_0 = arith.constant 0 : i32
    return %arg0, %c0_i32 : i32, i32
  }
}

</mosaic_0001>

<bundles_post_ra>
// kernel: tpu_custom_call.1
= control target key start
LH: loop header
LB: loop body
LE: loop exit
PB: predicated region body
PF: predicated region fallthrough
CT: control target
= control target key end

     0   :  { %19 = vsyncpa [#allocation3], 0  ;;  %s3044_s0 = inlined_call_operand.vmem [shape: bf16[8,768], index: 0, kind: input, shape index: {}]   ;;  %s3045_s1 = inlined_call_operand.vmem [shape: bf16[8,768], index: 1, kind: input, shape index: {}]   ;;  %s3046_s2 = inlined_call_operand.vmem [shape: bf16[8,768], index: 2, kind: input, shape index: {}]   ;;  %s3047_s3 = inlined_call_operand.hbm [shape: bf16[768,128], index: 3, kind: input, shape index: {}]   ;;  %s3048_s4 = inlined_call_operand.vmem [shape: f32[1,128], index: 4, kind: input, shape index: {}]   ;;  %s3049_s5 = inlined_call_operand.hbm [shape: bf16[768,128], index: 5, kind: input, shape index: {}]   ;;  %s3050_s6 = inlined_call_operand.vmem [shape: f32[1,128], index: 6, kind: input, shape index: {}]   ;;  %s3051_s7 = inlined_call_operand.hbm [shape: bf16[768,128], index: 7, kind: input, shape index: {}]   ;;  %s3052_s8 = inlined_call_operand.vmem [shape: f32[1,128], index: 8, kind: input, shape index: {}]   ;;  %s3053_s9 = inlined_call_operand.vmem [shape: bf16[384,6], index: 9, kind: input, shape index: {}]   ;;  %s3054_s10 = inlined_call_operand.vmem [shape: f32[1,6], index: 10, kind: input, shape index: {}]   ;;  %s3055_s11 = inlined_call_operand.vmem [shape: s32[8,1], index: 11, kind: input, shape index: {}]   ;;  %s3056_s12 = inlined_call_operand.hbm [shape: f32[8,6], index: 12, kind: output, shape index: {0}]   ;;  %s3057_s13 = inlined_call_operand.vmem [shape: f32[8,1], index: 13, kind: output, shape index: {1}]  }
   0x1   :  { %20 = vsyncpa [#allocation6], 0 }
   0x2   :  { %21 = vsyncpa [#allocation4], 0  ;;  %s47_s27 = sshll.u32 %s3049_s5, 4  ;;  %s2833_s28 = smov [#allocation5]   ;;  %s48_s27 = int_to_ptr.hbm [resolvable:$true] %s47_s27 }
   0x3   :  { %s49_s29 = sshll.u32 %s2833_s28, 4  ;;  %s32_s15 = sshll.u32 %s3047_s3, 4  ;;  %s50_s29 = int_to_ptr.vmem [resolvable:$true] %s49_s29  ;;  %s33_s15 = int_to_ptr.hbm [resolvable:$true] %s32_s15 }
   0x4   :  { %s2834_s16 = smov 64   ;;  %s2835_s17 = smov 4  }
   0x5   :  { %55 = dma.hbm_to_vmem [thread:$0]  %s48_s27, 6144, %s50_s29, [#allocation6], %s2834_s16, %s2834_s16, %s2835_s17  }
   0x6   :  { %s2836_s18 = smov [#allocation2]   ;;  %s62_s22 = sshll.u32 %s3051_s7, 4  ;;  %s63_s22 = int_to_ptr.hbm [resolvable:$true] %s62_s22 }
   0x7   :  { %s34_s19 = sshll.u32 %s2836_s18, 4  ;;  %s2837_s5 = smov [#allocation7]   ;;  %s35_s19 = int_to_ptr.vmem [resolvable:$true] %s34_s19 }
   0x8   :  { %40 = dma.hbm_to_vmem [thread:$0]  %s33_s15, 6144, %s35_s19, [#allocation3], %s2834_s16, %s2834_s16, %s2835_s17  }
   0x9   :  { %s64_s23 = sshll.u32 %s2837_s5, 4  ;;  %s65_s23 = int_to_ptr.vmem [resolvable:$true] %s64_s23 }
   0xa   :  { %70 = dma.hbm_to_vmem [thread:$0]  %s63_s22, 6144, %s65_s23, [#allocation6], %s2834_s16, %s2834_s16, %s2835_s17  }
   0xb   :  { %2827 = dma.done.wait [#allocation3], 6144  }
   0xc   :  { %2828 = vsyncadd [#allocation3], 4294961152 }
   0xd   :  { %2829 = dma.done.wait [#allocation6], 12288  }
   0xe   :  { %2830 = vsyncadd [#allocation6], 4294955008  ;;  %v2546_v0 = vld [vmem:[#allocation2 + $0x38] sm:$0xff]  ;;  %v2545_v4 = vld [vmem:[#allocation2 + $0x30] sm:$0xff]  ;;  %vm1804_vm0 = vcmask 48128   ;;  %s1850_s27 = sshll.u32 %s3056_s12, 4  ;;  %s1851_s27 = int_to_ptr.hbm [resolvable:$true] %s1850_s27 }
   0xf   :  { %v2554_v1 = vld [vmem:[#allocation2 + $0x78] sm:$0xff]  ;;  %503 = vmatpush.bf16.msra.mxu0 %v2546_v0  ;;  %v2553_v5 = vld [vmem:[#allocation2 + $0x70] sm:$0xff]  ;;  %v2544_v8 = vld [vmem:[#allocation2 + $0x28] sm:$0xff]  ;;  %vm1841_vm3 = vcmask 7168  }
  0x10   :  { %v2562_v2 = vld [vmem:[#allocation2 + $0xb8] sm:$0xff]  ;;  %516 = vmatpush.bf16.msra.mxu1 %v2554_v1  ;;  %v2561_v6 = vld [vmem:[#allocation2 + $0xb0] sm:$0xff]  ;;  %v2552_v9 = vld [vmem:[#allocation2 + $0x68] sm:$0xff] }
  0x11   :  { %v2570_v3 = vld [vmem:[#allocation2 + $0xf8] sm:$0xff]  ;;  %529 = vmatpush.bf16.msra.mxu2 %v2562_v2  ;;  %v2569_v7 = vld [vmem:[#allocation2 + $0xf0] sm:$0xff]  ;;  %v2560_v10 = vld [vmem:[#allocation2 + $0xa8] sm:$0xff] }
  0x12   :  { %542 = vmatpush.bf16.msra.mxu3 %v2570_v3  ;;  %v2568_v11 = vld [vmem:[#allocation2 + $0xe8] sm:$0xff]  ;;  %v2543_v12 = vld [vmem:[#allocation2 + $0x20] sm:$0xff]  ;;  %v2542_v16 = vld [vmem:[#allocation2 + $0x18] sm:$0xff] }
  0x13   :  { %504 = vmatpush.bf16.msra.mxu0 %v2545_v4  ;;  %v2551_v13 = vld [vmem:[#allocation2 + $0x60] sm:$0xff]  ;;  %v2550_v17 = vld [vmem:[#allocation2 + $0x58] sm:$0xff]  ;;  %v2541_v20 = vld [vmem:[#allocation2 + $0x10] sm:$0xff] }
  0x14   :  { %517 = vmatpush.bf16.msra.mxu1 %v2553_v5  ;;  %v2559_v14 = vld [vmem:[#allocation2 + $0xa0] sm:$0xff]  ;;  %v2558_v18 = vld [vmem:[#allocation2 + $0x98] sm:$0xff]  ;;  %v2549_v21 = vld [vmem:[#allocation2 + $0x50] sm:$0xff] }
  0x15   :  { %530 = vmatpush.bf16.msra.mxu2 %v2561_v6  ;;  %v2567_v15 = vld [vmem:[#allocation2 + $0xe0] sm:$0xff]  ;;  %v2566_v19 = vld [vmem:[#allocation2 + $0xd8] sm:$0xff]  ;;  %v2557_v22 = vld [vmem:[#allocation2 + $0x90] sm:$0xff] }
  0x16   :  { %543 = vmatpush.bf16.msra.mxu3 %v2569_v7  ;;  %v2565_v23 = vld [vmem:[#allocation2 + $0xd0] sm:$0xff]  ;;  %v2540_v24 = vld [vmem:[#allocation2 + $0x8] sm:$0xff]  ;;  %v91_v26 = vld [vmem:[%s3044_s0] sm:$0xff] }
  0x17   :  { %505 = vmatpush.bf16.msra.mxu0 %v2544_v8  ;;  %v2548_v25 = vld [vmem:[#allocation2 + $0x48] sm:$0xff]  ;;  %v197_v30 = vunpack.c.l.b16 %v91_v26  ;;  %v2539_v31 = vld [vmem:[#allocation2] sm:$0xff]  ;;  %v198_v33 = vunpack.c.h.b16 %v91_v26  ;;  %v2578_v35 = vld [vmem:[#allocation2 + $0x138] sm:$0xff] }
  0x18   :  { %518 = vmatpush.bf16.msra.mxu1 %v2552_v9  ;;  %v2556_v27 = vld [vmem:[#allocation2 + $0x88] sm:$0xff]  ;;  %v2547_v32 = vld [vmem:[#allocation2 + $0x40] sm:$0xff]  ;;  %v2586_v37 = vld [vmem:[#allocation2 + $0x178] sm:$0xff] }
  0x19   :  { %531 = vmatpush.bf16.msra.mxu2 %v2560_v10  ;;  %v2564_v28 = vld [vmem:[#allocation2 + $0xc8] sm:$0xff]  ;;  %v2555_v34 = vld [vmem:[#allocation2 + $0x80] sm:$0xff]  ;;  %v2594_v38 = vld [vmem:[#allocation5 + $0x38] sm:$0xff]  ;;  %v203_v40 = vpack.c.b16 %v197_v30, %v197_v30  ;;  %v204_v43 = vpack.c.b16 %v198_v33, %v198_v33 }
  0x1a   :  { %544 = vmatpush.bf16.msra.mxu3 %v2568_v11  ;;  %v92_v29 = vld [vmem:[%s3044_s0 + $0x8] sm:$0xff]  ;;  %v2563_v39 = vld [vmem:[#allocation2 + $0xc0] sm:$0xff]  ;;  %v2602_v42 = vld [vmem:[#allocation5 + $0x78] sm:$0xff] }
  0x1b   :  { %506 = vmatpush.bf16.msra.mxu0 %v2543_v12  ;;  %v199_v36 = vunpack.c.l.b16 %v92_v29  ;;  %v200_v41 = vunpack.c.h.b16 %v92_v29  ;;  %v2577_v44 = vld [vmem:[#allocation2 + $0x130] sm:$0xff]  ;;  %v2576_v50 = vld [vmem:[#allocation2 + $0x128] sm:$0xff]  ;;  %v2575_v54 = vld [vmem:[#allocation2 + $0x120] sm:$0xff] }
  0x1c   :  { %519 = vmatpush.bf16.msra.mxu1 %v2551_v13  ;;  %v2585_v46 = vld [vmem:[#allocation2 + $0x170] sm:$0xff]  ;;  %v2584_v51 = vld [vmem:[#allocation2 + $0x168] sm:$0xff]  ;;  %v2583_v55 = vld [vmem:[#allocation2 + $0x160] sm:$0xff] }
  0x1d   :  { %532 = vmatpush.bf16.msra.mxu2 %v2559_v14  ;;  %v205_v45 = vpack.c.b16 %v199_v36, %v199_v36  ;;  %v2593_v47 = vld [vmem:[#allocation5 + $0x30] sm:$0xff]  ;;  %v206_v48 = vpack.c.b16 %v200_v41, %v200_v41  ;;  %v2592_v52 = vld [vmem:[#allocation5 + $0x28] sm:$0xff]  ;;  %v2591_v56 = vld [vmem:[#allocation5 + $0x20] sm:$0xff] }
  0x1e   :  { %545 = vmatpush.bf16.msra.mxu3 %v2567_v15  ;;  %v2601_v49 = vld [vmem:[#allocation5 + $0x70] sm:$0xff]  ;;  %v2600_v53 = vld [vmem:[#allocation5 + $0x68] sm:$0xff]  ;;  %v2599_v57 = vld [vmem:[#allocation5 + $0x60] sm:$0xff] }
  0x1f   :  { %507 = vmatpush.bf16.msra.mxu0 %v2542_v16  ;;  %v2574_v58 = vld [vmem:[#allocation2 + $0x118] sm:$0xff]  ;;  %v2573_v62 = vld [vmem:[#allocation2 + $0x110] sm:$0xff]  ;;  %v2572_v2 = vld [vmem:[#allocation2 + $0x108] sm:$0xff] }
  0x20   :  { %520 = vmatpush.bf16.msra.mxu1 %v2550_v17  ;;  %v2582_v59 = vld [vmem:[#allocation2 + $0x158] sm:$0xff]  ;;  %v2581_v63 = vld [vmem:[#allocation2 + $0x150] sm:$0xff]  ;;  %v2580_v3 = vld [vmem:[#allocation2 + $0x148] sm:$0xff] }
  0x21   :  { %533 = vmatpush.bf16.msra.mxu2 %v2558_v18  ;;  %v2590_v60 = vld [vmem:[#allocation5 + $0x18] sm:$0xff]  ;;  %v2589_v0 = vld [vmem:[#allocation5 + $0x10] sm:$0xff]  ;;  %v2588_v4 = vld [vmem:[#allocation5 + $0x8] sm:$0xff] }
  0x22   :  { %546 = vmatpush.bf16.msra.mxu3 %v2566_v19  ;;  %v2598_v61 = vld [vmem:[#allocation5 + $0x58] sm:$0xff]  ;;  %v2597_v1 = vld [vmem:[#allocation5 + $0x50] sm:$0xff]  ;;  %v582_v6 = vld [vmem:[%s3045_s1] sm:$0xff] }
  0x23   :  { %508 = vmatpush.bf16.msra.mxu0 %v2541_v20  ;;  %v93_v5 = vld [vmem:[%s3044_s0 + $0x10] sm:$0xff]  ;;  %v2596_v7 = vld [vmem:[#allocation5 + $0x48] sm:$0xff]  ;;  %v2571_v8 = vld [vmem:[#allocation2 + $0x100] sm:$0xff]  ;;  %v688_v13 = vunpack.c.l.b16 %v582_v6  ;;  %v689_v18 = vunpack.c.h.b16 %v582_v6 }
  0x24   :  { %521 = vmatpush.bf16.msra.mxu1 %v2549_v21  ;;  %v201_v9 = vunpack.c.l.b16 %v93_v5  ;;  %v2579_v10 = vld [vmem:[#allocation2 + $0x140] sm:$0xff]  ;;  %v202_v12 = vunpack.c.h.b16 %v93_v5  ;;  %v2610_v14 = vld [vmem:[#allocation5 + $0xb8] sm:$0xff]  ;;  %v2616_v29 = vld [vmem:[#allocation5 + $0xe8] sm:$0xff] }
  0x25   :  { %534 = vmatpush.bf16.msra.mxu2 %v2557_v22  ;;  %v2587_v11 = vld [vmem:[#allocation5] sm:$0xff]  ;;  %v2618_v15 = vld [vmem:[#allocation5 + $0xf8] sm:$0xff]  ;;  %v694_v22 = vpack.c.b16 %v688_v13, %v688_v13  ;;  %v695_v26 = vpack.c.b16 %v689_v18, %v689_v18  ;;  %v2624_v30 = vld [vmem:[#allocation5 + $0x128] sm:$0xff] }
  0x26   :  { %547 = vmatpush.bf16.msra.mxu3 %v2565_v23  ;;  %v2626_v16 = vld [vmem:[#allocation5 + $0x138] sm:$0xff]  ;;  %v2595_v17 = vld [vmem:[#allocation5 + $0x40] sm:$0xff]  ;;  %v207_v19 = vpack.c.b16 %v201_v9, %v201_v9  ;;  %v208_v21 = vpack.c.b16 %v202_v12, %v202_v12  ;;  %v2609_v23 = vld [vmem:[#allocation5 + $0xb0] sm:$0xff] }
  0x27   :  { %509 = vmatpush.bf16.msra.mxu0 %v2540_v24  ;;  %v2634_v20 = vld [vmem:[#allocation5 + $0x178] sm:$0xff]  ;;  %v2617_v24 = vld [vmem:[#allocation5 + $0xf0] sm:$0xff]  ;;  %v2615_v33 = vld [vmem:[#allocation5 + $0xe0] sm:$0xff] }
  0x28   :  { %522 = vmatpush.bf16.msra.mxu1 %v2548_v25  ;;  %v2625_v25 = vld [vmem:[#allocation5 + $0x130] sm:$0xff]  ;;  %v2606_v36 = vld [vmem:[#allocation5 + $0x98] sm:$0xff]  ;;  %v2640_v5 = vld [vmem:[#allocation7 + $0x28] sm:$0xff] }
  0x29   :  { %535 = vmatpush.bf16.msra.mxu2 %v2556_v27  ;;  %v2633_v27 = vld [vmem:[#allocation5 + $0x170] sm:$0xff]  ;;  %v2648_v6 = vld [vmem:[#allocation7 + $0x68] sm:$0xff]  ;;  %v2639_v9 = vld [vmem:[#allocation7 + $0x20] sm:$0xff] }
  0x2a   :  { %548 = vmatpush.bf16.msra.mxu3 %v2564_v28  ;;  %v2608_v28 = vld [vmem:[#allocation5 + $0xa8] sm:$0xff]  ;;  %v2613_v41 = vld [vmem:[#allocation5 + $0xd0] sm:$0xff]  ;;  %v2663_v12 = vld [vmem:[#allocation7 + $0xe0] sm:$0xff] }
  0x2b   :  { %510 = vmatpush.bf16.msra.mxu0 %v2539_v31  ;;  %v2632_v31 = vld [vmem:[#allocation5 + $0x168] sm:$0xff]  ;;  %v2638_v13 = vld [vmem:[#allocation7 + $0x18] sm:$0xff]  ;;  %v2645_v18 = vld [vmem:[#allocation7 + $0x50] sm:$0xff] }
  0x2c   :  { %523 = vmatpush.bf16.msra.mxu1 %v2547_v32  ;;  %v2607_v32 = vld [vmem:[#allocation5 + $0xa0] sm:$0xff] }
  0x2d   :  { %536 = vmatpush.bf16.msra.mxu2 %v2555_v34  ;;  %v2623_v34 = vld [vmem:[#allocation5 + $0x120] sm:$0xff] }
  0x2e   :  { %549 = vmatpush.bf16.msra.mxu3 %v2563_v39  ;;  %511 = vmatmul.bf16.vlgmr.msra.gmra.mxu0 %v203_v40  ;;  %v2630_v39 = vld [vmem:[#allocation5 + $0x158] sm:$0xff]  ;;  %v2605_v40 = vld [vmem:[#allocation5 + $0x90] sm:$0xff] }
  0x2f   :  { %555 = vmatpush.bf16.msrb.mxu0 %v2578_v35  ;;  %524 = vmatmul.bf16.vlgmr.msra.gmra.mxu1 %v204_v43  ;;  %v2631_v35 = vld [vmem:[#allocation5 + $0x160] sm:$0xff]  ;;  %v2629_v43 = vld [vmem:[#allocation5 + $0x150] sm:$0xff] }
  0x30   :  { %568 = vmatpush.bf16.msrb.mxu1 %v2586_v37  ;;  %537 = vmatmul.bf16.vlgmr.msra.gmra.mxu2 %v205_v45  ;;  %v2614_v37 = vld [vmem:[#allocation5 + $0xd8] sm:$0xff]  ;;  %v2612_v45 = vld [vmem:[#allocation5 + $0xc8] sm:$0xff] }
  0x31   :  { %994 = vmatpush.bf16.msrb.mxu2 %v2594_v38  ;;  %550 = vmatmul.bf16.vlgmr.msra.gmra.mxu3 %v206_v48  ;;  %v2622_v38 = vld [vmem:[#allocation5 + $0x118] sm:$0xff]  ;;  %v584_v48 = vld [vmem:[%s3045_s1 + $0x10] sm:$0xff] }
  0x32   :  { %1007 = vmatpush.bf16.msrb.mxu3 %v2602_v42  ;;  %v2621_v42 = vld [vmem:[#allocation5 + $0x110] sm:$0xff] }
  0x33   :  { %556 = vmatpush.bf16.msrb.mxu0 %v2577_v44  ;;  %v2604_v44 = vld [vmem:[#allocation5 + $0x88] sm:$0xff] }
  0x34   :  { %569 = vmatpush.bf16.msrb.mxu1 %v2585_v46  ;;  %v583_v46 = vld [vmem:[%s3045_s1 + $0x8] sm:$0xff] }
  0x35   :  { %995 = vmatpush.bf16.msrb.mxu2 %v2593_v47  ;;  %v2620_v47 = vld [vmem:[#allocation5 + $0x108] sm:$0xff] }
  0x36   :  { %1008 = vmatpush.bf16.msrb.mxu3 %v2601_v49  ;;  %v2628_v49 = vld [vmem:[#allocation5 + $0x148] sm:$0xff] }
  0x37   :  { %557 = vmatpush.bf16.msrb.mxu0 %v2576_v50  ;;  %v690_v50 = vunpack.c.l.b16 %v583_v46 }
  0x38   :  { %570 = vmatpush.bf16.msrb.mxu1 %v2584_v51  ;;  %v691_v51 = vunpack.c.h.b16 %v583_v46  ;;  %v2680_v46 = vld [vmem:[#allocation7 + $0x168] sm:$0xff] }
  0x39   :  { %996 = vmatpush.bf16.msrb.mxu2 %v2592_v52  ;;  %v2603_v52 = vld [vmem:[#allocation5 + $0x80] sm:$0xff] }
  0x3a   :  { %1009 = vmatpush.bf16.msrb.mxu3 %v2600_v53  ;;  %v2611_v53 = vld [vmem:[#allocation5 + $0xc0] sm:$0xff] }
  0x3b   :  { %558 = vmatpush.bf16.msrb.mxu0 %v2575_v54  ;;  %v692_v54 = vunpack.c.l.b16 %v584_v48 }
  0x3c   :  { %571 = vmatpush.bf16.msrb.mxu1 %v2583_v55  ;;  %v2619_v55 = vld [vmem:[#allocation5 + $0x100] sm:$0xff] }
  0x3d   :  { %997 = vmatpush.bf16.msrb.mxu2 %v2591_v56  ;;  %v2642_v56 = vld [vmem:[#allocation7 + $0x38] sm:$0xff] }
  0x3e   :  { %1010 = vmatpush.bf16.msrb.mxu3 %v2599_v57  ;;  %v693_v57 = vunpack.c.h.b16 %v584_v48  ;;  %v2679_v48 = vld [vmem:[#allocation7 + $0x160] sm:$0xff] }
  0x3f   :  { %559 = vmatpush.bf16.msrb.mxu0 %v2574_v58  ;;  %v2650_v58 = vld [vmem:[#allocation7 + $0x78] sm:$0xff] }
  0x40   :  { %572 = vmatpush.bf16.msrb.mxu1 %v2582_v59  ;;  %v2627_v59 = vld [vmem:[#allocation5 + $0x140] sm:$0xff] }
  0x41   :  { %998 = vmatpush.bf16.msrb.mxu2 %v2590_v60  ;;  %v696_v60 = vpack.c.b16 %v690_v50, %v690_v50  ;;  %v2670_v50 = vld [vmem:[#allocation7 + $0x118] sm:$0xff] }
  0x42   :  { %1011 = vmatpush.bf16.msrb.mxu3 %v2598_v61  ;;  %v697_v61 = vpack.c.b16 %v691_v51, %v691_v51  ;;  %v2688_v51 = vld [vmem:[%s3053_s9 + $0x28] sm:$0xff] }
  0x43   :  { %560 = vmatpush.bf16.msrb.mxu0 %v2573_v62  ;;  %v698_v62 = vpack.c.b16 %v692_v54, %v692_v54  ;;  %v2687_v54 = vld [vmem:[%s3053_s9 + $0x20] sm:$0xff] }
  0x44   :  { %573 = vmatpush.bf16.msrb.mxu1 %v2581_v63  ;;  %v2666_v63 = vld [vmem:[#allocation7 + $0xf8] sm:$0xff] }
  0x45   :  { %999 = vmatpush.bf16.msrb.mxu2 %v2589_v0  ;;  %v699_v0 = vpack.c.b16 %v693_v57, %v693_v57  ;;  %v1075_v57 = vld [vmem:[%s3046_s2 + $0x10] sm:$0xff] }
  0x46   :  { %1012 = vmatpush.bf16.msrb.mxu3 %v2597_v1  ;;  %v2641_v1 = vld [vmem:[#allocation7 + $0x30] sm:$0xff] }
  0x47   :  { %561 = vmatpush.bf16.msrb.mxu0 %v2572_v2  ;;  %v2649_v2 = vld [vmem:[#allocation7 + $0x70] sm:$0xff] }
  0x48   :  { %574 = vmatpush.bf16.msrb.mxu1 %v2580_v3  ;;  %v2658_v3 = vld [vmem:[#allocation7 + $0xb8] sm:$0xff] }
  0x49   :  { %1000 = vmatpush.bf16.msrb.mxu2 %v2588_v4  ;;  %v2665_v4 = vld [vmem:[#allocation7 + $0xf0] sm:$0xff] }
  0x4a   :  { %1013 = vmatpush.bf16.msrb.mxu3 %v2596_v7  ;;  %v2657_v7 = vld [vmem:[#allocation7 + $0xb0] sm:$0xff] }
  0x4b   :  { %562 = vmatpush.bf16.msrb.mxu0 %v2571_v8  ;;  %v2664_v8 = vld [vmem:[#allocation7 + $0xe8] sm:$0xff] }
  0x4c   :  { %575 = vmatpush.bf16.msrb.mxu1 %v2579_v10  ;;  %v2647_v10 = vld [vmem:[#allocation7 + $0x60] sm:$0xff] }
  0x4d   :  { %1001 = vmatpush.bf16.msrb.mxu2 %v2587_v11  ;;  %v2656_v11 = vld [vmem:[#allocation7 + $0xa8] sm:$0xff] }
  0x4e   :  { %1014 = vmatpush.bf16.msrb.mxu3 %v2595_v17  ;;  %563 = vmatmul.bf16.vlgmr.msrb.gmra.mxu0 %v207_v19  ;;  %v2637_v17 = vld [vmem:[#allocation7 + $0x10] sm:$0xff]  ;;  %v2654_v19 = vld [vmem:[#allocation7 + $0x98] sm:$0xff] }
  0x4f   :  { %1020 = vmatpush.bf16.msra.mxu0 %v2610_v14  ;;  %576 = vmatmul.bf16.vlgmr.msrb.gmra.mxu1 %v208_v21  ;;  %v2646_v14 = vld [vmem:[#allocation7 + $0x58] sm:$0xff]  ;;  %v2636_v21 = vld [vmem:[#allocation7 + $0x8] sm:$0xff] }
  0x50   :  { %1033 = vmatpush.bf16.msra.mxu1 %v2618_v15  ;;  %1002 = vmatmul.bf16.vlgmr.msrb.gmra.mxu2 %v694_v22  ;;  %v2655_v15 = vld [vmem:[#allocation7 + $0xa0] sm:$0xff] }
  0x51   :  { %1046 = vmatpush.bf16.msra.mxu2 %v2626_v16  ;;  %1015 = vmatmul.bf16.vlgmr.msrb.gmra.mxu3 %v695_v26  ;;  %v2662_v16 = vld [vmem:[#allocation7 + $0xd8] sm:$0xff]  ;;  %v1073_v22 = vld [vmem:[%s3046_s2] sm:$0xff]  ;;  %v2660_v26 = vld [vmem:[#allocation7 + $0xc8] sm:$0xff] }
  0x52   :  { %1059 = vmatpush.bf16.msra.mxu3 %v2634_v20  ;;  %v2661_v20 = vld [vmem:[#allocation7 + $0xd0] sm:$0xff] }
  0x53   :  { %1021 = vmatpush.bf16.msra.mxu0 %v2609_v23  ;;  %v2644_v23 = vld [vmem:[#allocation7 + $0x48] sm:$0xff] }
  0x54   :  { %1034 = vmatpush.bf16.msra.mxu1 %v2617_v24  ;;  %v2653_v24 = vld [vmem:[#allocation7 + $0x90] sm:$0xff] }
  0x55   :  { %1047 = vmatpush.bf16.msra.mxu2 %v2625_v25  ;;  %v1179_v25 = vunpack.c.l.b16 %v1073_v22 }
  0x56   :  { %1060 = vmatpush.bf16.msra.mxu3 %v2633_v27  ;;  %v2635_v27 = vld [vmem:[#allocation7] sm:$0xff] }
  0x57   :  { %1022 = vmatpush.bf16.msra.mxu0 %v2608_v28  ;;  %v1180_v28 = vunpack.c.h.b16 %v1073_v22 }
  0x58   :  { %1035 = vmatpush.bf16.msra.mxu1 %v2616_v29  ;;  %v2643_v29 = vld [vmem:[#allocation7 + $0x40] sm:$0xff] }
  0x59   :  { %1048 = vmatpush.bf16.msra.mxu2 %v2624_v30  ;;  %v2674_v30 = vld [vmem:[#allocation7 + $0x138] sm:$0xff] }
  0x5a   :  { %1061 = vmatpush.bf16.msra.mxu3 %v2632_v31  ;;  %v2682_v31 = vld [vmem:[#allocation7 + $0x178] sm:$0xff] }
  0x5b   :  { %1023 = vmatpush.bf16.msra.mxu0 %v2607_v32  ;;  %v2652_v32 = vld [vmem:[#allocation7 + $0x88] sm:$0xff] }
  0x5c   :  { %1036 = vmatpush.bf16.msra.mxu1 %v2615_v33  ;;  %v1074_v33 = vld [vmem:[%s3046_s2 + $0x8] sm:$0xff] }
  0x5d   :  { %1049 = vmatpush.bf16.msra.mxu2 %v2623_v34  ;;  %v1185_v34 = vpack.c.b16 %v1179_v25, %v1179_v25 }
  0x5e   :  { %1062 = vmatpush.bf16.msra.mxu3 %v2631_v35  ;;  %v2659_v35 = vld [vmem:[#allocation7 + $0xc0] sm:$0xff] }
  0x5f   :  { %1024 = vmatpush.bf16.msra.mxu0 %v2606_v36  ;;  %v1182_v36 = vunpack.c.h.b16 %v1074_v33 }
  0x60   :  { %1037 = vmatpush.bf16.msra.mxu1 %v2614_v37  ;;  %v1186_v37 = vpack.c.b16 %v1180_v28, %v1180_v28 }
  0x61   :  { %1050 = vmatpush.bf16.msra.mxu2 %v2622_v38  ;;  %v2673_v38 = vld [vmem:[#allocation7 + $0x130] sm:$0xff] }
  0x62   :  { %1063 = vmatpush.bf16.msra.mxu3 %v2630_v39  ;;  %v1181_v39 = vunpack.c.l.b16 %v1074_v33 }
  0x63   :  { %1025 = vmatpush.bf16.msra.mxu0 %v2605_v40  ;;  %v2690_v40 = vld [vmem:[%s3053_s9 + $0x38] sm:$0xff] }
  0x64   :  { %1038 = vmatpush.bf16.msra.mxu1 %v2613_v41  ;;  %v2681_v41 = vld [vmem:[#allocation7 + $0x170] sm:$0xff] }
  0x65   :  { %1051 = vmatpush.bf16.msra.mxu2 %v2621_v42  ;;  %v2651_v42 = vld [vmem:[#allocation7 + $0x80] sm:$0xff] }
  0x66   :  { %1064 = vmatpush.bf16.msra.mxu3 %v2629_v43  ;;  %v1188_v43 = vpack.c.b16 %v1182_v36, %v1182_v36 }
  0x67   :  { %1026 = vmatpush.bf16.msra.mxu0 %v2604_v44  ;;  %v2672_v44 = vld [vmem:[#allocation7 + $0x128] sm:$0xff] }
  0x68   :  { %1039 = vmatpush.bf16.msra.mxu1 %v2612_v45  ;;  %v1187_v45 = vpack.c.b16 %v1181_v39, %v1181_v39 }
  0x69   :  { %1052 = vmatpush.bf16.msra.mxu2 %v2620_v47  ;;  %v2671_v47 = vld [vmem:[#allocation7 + $0x120] sm:$0xff] }
  0x6a   :  { %1065 = vmatpush.bf16.msra.mxu3 %v2628_v49  ;;  %v2689_v49 = vld [vmem:[%s3053_s9 + $0x30] sm:$0xff] }
  0x6b   :  { %1027 = vmatpush.bf16.msra.mxu0 %v2603_v52  ;;  %v2678_v52 = vld [vmem:[#allocation7 + $0x158] sm:$0xff] }
  0x6c   :  { %1040 = vmatpush.bf16.msra.mxu1 %v2611_v53  ;;  %v2669_v53 = vld [vmem:[#allocation7 + $0x110] sm:$0xff] }
  0x6d   :  { %1053 = vmatpush.bf16.msra.mxu2 %v2619_v55  ;;  %v2677_v55 = vld [vmem:[#allocation7 + $0x150] sm:$0xff] }
  0x6e   :  { %1066 = vmatpush.bf16.msra.mxu3 %v2627_v59  ;;  %1028 = vmatmul.bf16.vlgmr.msra.gmra.mxu0 %v696_v60  ;;  %v2676_v59 = vld [vmem:[#allocation7 + $0x148] sm:$0xff]  ;;  %v1183_v60 = vunpack.c.l.b16 %v1075_v57 }
  0x6f   :  { %1485 = vmatpush.bf16.msrb.mxu0 %v2642_v56  ;;  %1041 = vmatmul.bf16.vlgmr.msra.gmra.mxu1 %v697_v61  ;;  %v2668_v56 = vld [vmem:[#allocation7 + $0x108] sm:$0xff]  ;;  %v2667_v61 = vld [vmem:[#allocation7 + $0x100] sm:$0xff] }
  0x70   :  { %1498 = vmatpush.bf16.msrb.mxu1 %v2650_v58  ;;  %1054 = vmatmul.bf16.vlgmr.msra.gmra.mxu2 %v698_v62  ;;  %v2686_v58 = vld [vmem:[%s3053_s9 + $0x18] sm:$0xff]  ;;  %v1184_v62 = vunpack.c.h.b16 %v1075_v57 }
  0x71   :  { %1067 = vmatmul.bf16.vlgmr.msra.gmra.mxu3 %v699_v0  ;;  %1511 = vmatpush.bf16.msrb.mxu2 %v2658_v3  ;;  %v1189_v0 = vpack.c.b16 %v1183_v60, %v1183_v60  ;;  %v2685_v3 = vld [vmem:[%s3053_s9 + $0x10] sm:$0xff] }
  0x72   :  { %1524 = vmatpush.bf16.msrb.mxu3 %v2666_v63  ;;  %v2675_v63 = vld [vmem:[#allocation7 + $0x140] sm:$0xff]  ;;  %v2701_v60 = vld [vmem:[%s3053_s9 + $0x90] sm:$0xff] }
  0x73   :  { %1486 = vmatpush.bf16.msrb.mxu0 %v2641_v1  ;;  %v1190_v1 = vpack.c.b16 %v1184_v62, %v1184_v62 }
  0x74   :  { %1499 = vmatpush.bf16.msrb.mxu1 %v2649_v2 }
  0x75   :  { %1512 = vmatpush.bf16.msrb.mxu2 %v2657_v7 }
  0x76   :  { %1525 = vmatpush.bf16.msrb.mxu3 %v2665_v4 }
  0x77   :  { %1487 = vmatpush.bf16.msrb.mxu0 %v2640_v5  ;;  %v2684_v5 = vld [vmem:[%s3053_s9 + $0x8] sm:$0xff] }
  0x78   :  { %1500 = vmatpush.bf16.msrb.mxu1 %v2648_v6 }
  0x79   :  { %1513 = vmatpush.bf16.msrb.mxu2 %v2656_v11  ;;  %v2717_v11 = vld [vmem:[%s3048_s4] ss:$0 sm:$0xff] }
  0x7a   :  { %1526 = vmatpush.bf16.msrb.mxu3 %v2664_v8  ;;  %v2683_v8 = vld [vmem:[%s3053_s9] sm:$0xff] }
  0x7b   :  { %1488 = vmatpush.bf16.msrb.mxu0 %v2639_v9 }
  0x7c   :  { %1501 = vmatpush.bf16.msrb.mxu1 %v2647_v10 }
  0x7d   :  { %1514 = vmatpush.bf16.msrb.mxu2 %v2655_v15 }
  0x7e   :  { %1527 = vmatpush.bf16.msrb.mxu3 %v2663_v12  ;;  %v2698_v12 = vld [vmem:[%s3053_s9 + $0x78] sm:$0xff] }
  0x7f   :  { %1489 = vmatpush.bf16.msrb.mxu0 %v2638_v13  ;;  %v2697_v13 = vld [vmem:[%s3053_s9 + $0x70] sm:$0xff] }
  0x80   :  { %1502 = vmatpush.bf16.msrb.mxu1 %v2646_v14 }
  0x81   :  { %1515 = vmatpush.bf16.msrb.mxu2 %v2654_v19  ;;  %v2695_v19 = vld [vmem:[%s3053_s9 + $0x60] sm:$0xff] }
  0x82   :  { %1528 = vmatpush.bf16.msrb.mxu3 %v2662_v16 }
  0x83   :  { %1490 = vmatpush.bf16.msrb.mxu0 %v2637_v17  ;;  %v2696_v17 = vld [vmem:[%s3053_s9 + $0x68] sm:$0xff] }
  0x84   :  { %1503 = vmatpush.bf16.msrb.mxu1 %v2645_v18 }
  0x85   :  { %1516 = vmatpush.bf16.msrb.mxu2 %v2653_v24 }
  0x86   :  { %1529 = vmatpush.bf16.msrb.mxu3 %v2661_v20 }
  0x87   :  { %1491 = vmatpush.bf16.msrb.mxu0 %v2636_v21 }
  0x88   :  { %1504 = vmatpush.bf16.msrb.mxu1 %v2644_v23  ;;  %v2694_v23 = vld [vmem:[%s3053_s9 + $0x58] sm:$0xff] }
  0x89   :  { %1517 = vmatpush.bf16.msrb.mxu2 %v2652_v32  ;;  %v2692_v32 = vld [vmem:[%s3053_s9 + $0x48] sm:$0xff] }
  0x8a   :  { %1530 = vmatpush.bf16.msrb.mxu3 %v2660_v26 }
  0x8b   :  { %1492 = vmatpush.bf16.msrb.mxu0 %v2635_v27  ;;  %v2693_v27 = vld [vmem:[%s3053_s9 + $0x50] sm:$0xff] }
  0x8c   :  { %1505 = vmatpush.bf16.msrb.mxu1 %v2643_v29 }
  0x8d   :  { %1518 = vmatpush.bf16.msrb.mxu2 %v2651_v42  ;;  %v2706_v42 = vld [vmem:[%s3053_s9 + $0xb8] sm:$0xff] }
  0x8e   :  { %1493 = vmatmul.bf16.vlgmr.msrb.gmra.mxu0 %v1185_v34  ;;  %1531 = vmatpush.bf16.msrb.mxu3 %v2659_v35  ;;  %v2691_v35 = vld [vmem:[%s3053_s9 + $0x40] sm:$0xff] }
  0x8f   :  { %1537 = vmatpush.bf16.msra.mxu0 %v2674_v30  ;;  %1506 = vmatmul.bf16.vlgmr.msrb.gmra.mxu1 %v1186_v37 }
  0x90   :  { %1550 = vmatpush.bf16.msra.mxu1 %v2682_v31  ;;  %1519 = vmatmul.bf16.vlgmr.msrb.gmra.mxu2 %v1187_v45 }
  0x91   :  { %1532 = vmatmul.bf16.vlgmr.msrb.gmra.mxu3 %v1188_v43  ;;  %1646 = vmatpush.bf16.msra.mxu2 %v2698_v12 }
  0x92   :  { %1707 = vmatpush.bf16.msra.mxu3 %v2690_v40 }
  0x93   :  { %1538 = vmatpush.bf16.msra.mxu0 %v2673_v38  ;;  %v2718_v38 = vld [vmem:[%s3050_s6] ss:$0 sm:$0xff] }
  0x94   :  { %1551 = vmatpush.bf16.msra.mxu1 %v2681_v41 }
  0x95   :  { %1647 = vmatpush.bf16.msra.mxu2 %v2697_v13 }
  0x96   :  { %1708 = vmatpush.bf16.msra.mxu3 %v2689_v49 }
  0x97   :  { %1539 = vmatpush.bf16.msra.mxu0 %v2672_v44 }
  0x98   :  { %1552 = vmatpush.bf16.msra.mxu1 %v2680_v46  ;;  %v2705_v46 = vld [vmem:[%s3053_s9 + $0xb0] sm:$0xff] }
  0x99   :  { %1648 = vmatpush.bf16.msra.mxu2 %v2696_v17 }
  0x9a   :  { %1709 = vmatpush.bf16.msra.mxu3 %v2688_v51 }
  0x9b   :  { %1540 = vmatpush.bf16.msra.mxu0 %v2671_v47 }
  0x9c   :  { %1553 = vmatpush.bf16.msra.mxu1 %v2679_v48 }
  0x9d   :  { %1649 = vmatpush.bf16.msra.mxu2 %v2695_v19 }
  0x9e   :  { %1710 = vmatpush.bf16.msra.mxu3 %v2687_v54  ;;  %v2703_v54 = vld [vmem:[%s3053_s9 + $0xa0] sm:$0xff] }
  0x9f   :  { %1541 = vmatpush.bf16.msra.mxu0 %v2670_v50 }
  0xa0   :  { %1554 = vmatpush.bf16.msra.mxu1 %v2678_v52 }
  0xa1   :  { %1650 = vmatpush.bf16.msra.mxu2 %v2694_v23 }
  0xa2   :  { %1711 = vmatpush.bf16.msra.mxu3 %v2686_v58  ;;  %v2702_v58 = vld [vmem:[%s3053_s9 + $0x98] sm:$0xff] }
  0xa3   :  { %1542 = vmatpush.bf16.msra.mxu0 %v2669_v53  ;;  %v2704_v53 = vld [vmem:[%s3053_s9 + $0xa8] sm:$0xff] }
  0xa4   :  { %1555 = vmatpush.bf16.msra.mxu1 %v2677_v55 }
  0xa5   :  { %1651 = vmatpush.bf16.msra.mxu2 %v2693_v27 }
  0xa6   :  { %1712 = vmatpush.bf16.msra.mxu3 %v2685_v3 }
  0xa7   :  { %1543 = vmatpush.bf16.msra.mxu0 %v2668_v56 }
  0xa8   :  { %1556 = vmatpush.bf16.msra.mxu1 %v2676_v59 }
  0xa9   :  { %1652 = vmatpush.bf16.msra.mxu2 %v2692_v32  ;;  %v2838_v32 = vmov 0  }
  0xaa   :  { %1713 = vmatpush.bf16.msra.mxu3 %v2684_v5  ;;  %2715 = vset.pattern.permute.xlu1 %v2838_v32 }
  0xab   :  { %1544 = vmatpush.bf16.msra.mxu0 %v2667_v61  ;;  %v512_v2 = vpop.f32.mrf.mxu0  ;;  %2716 = vset.pattern.permute.xlu0 %v2838_v32 }
  0xac   :  { %1557 = vmatpush.bf16.msra.mxu1 %v2675_v63  ;;  %v525_v4 = vpop.f32.mrf.mxu1  ;;  %v513_v14 = vadd.f32 %v2717_v11, %v512_v2  ;;  %v2700_v63 = vld [vmem:[%s3053_s9 + $0x88] sm:$0xff] }
  0xad   :  { %1653 = vmatpush.bf16.msra.mxu2 %v2691_v35 }
  0xae   :  { %1545 = vmatmul.bf16.vlgmr.msra.gmra.mxu0 %v1189_v0  ;;  %1714 = vmatpush.bf16.msra.mxu3 %v2683_v8  ;;  %v526_v18 = vadd.f32 %v525_v4, %v513_v14  ;;  %v2699_v0 = vld [vmem:[%s3053_s9 + $0x80] sm:$0xff] }
  0xaf   :  { %1558 = vmatmul.bf16.vlgmr.msra.gmra.mxu1 %v1190_v1  ;;  %1785 = vmatpush.bf16.msrb.mxu0 %v2706_v42  ;;  %v2719_v4 = vld [vmem:[%s3052_s8] ss:$0 sm:$0xff] }
  0xb3   :  { %v514_v6 = vpop.f32.mrf.mxu0  ;;  %v538_v7 = vpop.f32.mrf.mxu2  ;;  %1786 = vmatpush.bf16.msrb.mxu0 %v2705_v46 }
  0xb4   :  { %v527_v9 = vpop.f32.mrf.mxu1  ;;  %v551_v10 = vpop.f32.mrf.mxu3  ;;  %v539_v20 = vadd.f32 %v538_v7, %v526_v18 }
  0xb6   :  { %v552_v21 = vadd.f32 %v551_v10, %v539_v20 }
  0xb7   :  { %1787 = vmatpush.bf16.msrb.mxu0 %v2704_v53 }
  0xbb   :  { %v540_v15 = vpop.f32.mrf.mxu2  ;;  %1788 = vmatpush.bf16.msrb.mxu0 %v2703_v54 }
  0xbc   :  { %v553_v16 = vpop.f32.mrf.mxu3 }
  0xbf   :  { %1789 = vmatpush.bf16.msrb.mxu0 %v2702_v58 }
  0xc3   :  { %1790 = vmatpush.bf16.msrb.mxu0 %v2701_v60 }
  0xc7   :  { %1791 = vmatpush.bf16.msrb.mxu0 %v2700_v63 }
  0xcb   :  { %v564_v22 = vpop.f32.mrf.mxu0  ;;  %1792 = vmatpush.bf16.msrb.mxu0 %v2699_v0 }
  0xcc   :  { %v565_v24 = vadd.f32 %v564_v22, %v552_v21  ;;  %v577_v25 = vpop.f32.mrf.mxu1 }
  0xce   :  { %v578_v26 = vadd.f32 %v577_v25, %v565_v24  ;;  %v2720_v25 = vld [vmem:[%s3054_s10] ss:$0 sm:$0xff]  ;;  %s2840_s10 = smov [#allocation8]  }
  0xd0   :  { %2721 = vtanh.f32 %v578_v26 }
  0xd3   :  { %v1003_v28 = vpop.f32.mrf.mxu2  ;;  %v566_v29 = vpop.f32.mrf.mxu0 }
  0xd4   :  { %v1016_v30 = vpop.f32.mrf.mxu3  ;;  %v579_v31 = vpop.f32.mrf.mxu1  ;;  %v1004_v39 = vadd.f32 %v2718_v38, %v1003_v28  ;;  %v1818_v38 = vlaneseq }
  0xd5   :  { %v1820_v31 = vld [vmem:[%s3055_s11] sm:$0xff]  ;;  %s1848_s11 = sshll.u32 %s2840_s10, 4  ;;  %s1849_s11 = int_to_ptr.vmem [resolvable:$true] %s1848_s11 }
  0xd6   :  { %v2722_v33 = vpop.eup %2721  ;;  %v1017_v40 = vadd.f32 %v1016_v30, %v1004_v39  ;;  %1822 = vperm.xlu1 %2715, %v1820_v31   ;;  %v1833_v39 = vshrl.u32 %v1818_v38, 7 }
  0xd7   :  { %v1564_v34 = vpack.c.bf16 %v2722_v33, %v2722_v33 }
  0xd8   :  { %vm1837_vm1 = vcmp.lt.s32.totalorder %v1833_v39, 2 }
  0xd9   :  { %1715 = vmatmul.bf16.vlgmr.msra.gmra.mxu3 %v1564_v34 }
  0xdb   :  { %v1005_v36 = vpop.f32.mrf.mxu2 }
  0xdc   :  { %v1018_v37 = vpop.f32.mrf.mxu3 }
  0xeb   :  { %v1029_v41 = vpop.f32.mrf.mxu0 }
  0xec   :  { %v1030_v43 = vadd.f32 %v1029_v41, %v1017_v40  ;;  %v1042_v44 = vpop.f32.mrf.mxu1  ;;  %v2839_v40 = vmov 0.0  }
  0xed   :  { %v2538_v41 = vsel %vm1837_vm1, 1.0, %v2839_v40 }
  0xee   :  { %v1043_v45 = vadd.f32 %v1042_v44, %v1030_v43  ;;  %v1819_v43 = vand.u32 127, %v1818_v38 }
  0xf3   :  { %v1055_v47 = vpop.f32.mrf.mxu2  ;;  %v1031_v50 = vpop.f32.mrf.mxu0 }
  0xf4   :  { %v1056_v48 = vadd.f32 %v1055_v47, %v1043_v45  ;;  %v1068_v49 = vpop.f32.mrf.mxu3  ;;  %v1044_v51 = vpop.f32.mrf.mxu1 }
  0xf6   :  { %v1069_v52 = vadd.f32 %v1068_v49, %v1056_v48 }
  0xf8   :  { %2723 = vtanh.f32 %v1069_v52 }
  0xfb   :  { %v1057_v55 = vpop.f32.mrf.mxu2 }
  0xfc   :  { %v1070_v56 = vpop.f32.mrf.mxu3 }
  0xfe   :  { %v2724_v57 = vpop.eup %2723 }
  0xff   :  { %v1581_v59 = vpack.c.bf16 %v2724_v57, %v2724_v57 }
 0x101   :  { %1654 = vmatmul.bf16.vlgmr.msra.gmra.mxu2 %v1581_v59 }
 0x10b   :  { %v1494_v61 = vpop.f32.mrf.mxu0 }
 0x10c   :  { %v1507_v62 = vpop.f32.mrf.mxu1  ;;  %v1495_v6 = vadd.f32 %v2719_v4, %v1494_v61 }
 0x10e   :  { %v1508_v8 = vadd.f32 %v1507_v62, %v1495_v6 }
 0x113   :  { %v1496_v1 = vpop.f32.mrf.mxu0  ;;  %v1520_v5 = vpop.f32.mrf.mxu2 }
 0x114   :  { %v1509_v2 = vpop.f32.mrf.mxu1  ;;  %v1533_v3 = vpop.f32.mrf.mxu3  ;;  %v1521_v10 = vadd.f32 %v1520_v5, %v1508_v8 }
 0x116   :  { %v1534_v11 = vadd.f32 %v1533_v3, %v1521_v10 }
 0x11b   :  { %v1522_v9 = vpop.f32.mrf.mxu2 }
 0x11c   :  { %v1535_v7 = vpop.f32.mrf.mxu3 }
 0x12b   :  { %v1546_v12 = vpop.f32.mrf.mxu0 }
 0x12c   :  { %v1547_v13 = vadd.f32 %v1546_v12, %v1534_v11  ;;  %v1559_v14 = vpop.f32.mrf.mxu1 }
 0x12e   :  { %v1560_v15 = vadd.f32 %v1559_v14, %v1547_v13 }
 0x130   :  { %2725 = vtanh.f32 %v1560_v15 }
 0x133   :  { %v1548_v16 = vpop.f32.mrf.mxu0 }
 0x134   :  { %v1561_v17 = vpop.f32.mrf.mxu1 }
 0x136   :  { %v2726_v18 = vpop.eup %2725 }
 0x137   :  { %v1720_v19 = vpack.c.bf16 %v2726_v18, %v2726_v18 }
 0x139   :  { %1793 = vmatmul.bf16.vlgmr.msrb.gmra.mxu0 %v1720_v19 }
 0x148   :  { %v1823_v44 = vpop.permute.xlu1 %1822 }
 0x149   :  { %vm1824_vm2 = vcmp.eq.s32.totalorder %v1819_v43, %v1823_v44 }
 0x14a   :  { %v2537_v47 = vsel %vm1824_vm2, 1.0, %v2839_v40 }
 0x15c   :  { %v1716_v20 = vpop.f32.mrf.mxu3 }
 0x164   :  { %v1718_v21 = vpop.f32.mrf.mxu3 }
 0x184   :  { %v1655_v22 = vpop.f32.mrf.mxu2 }
 0x185   :  { %v1717_v24 = vadd.f32 %v1716_v20, %v1655_v22 }
 0x18c   :  { %v1657_v23 = vpop.f32.mrf.mxu2 }
 0x1b6   :  { %v1794_v26 = vpop.f32.mrf.mxu0 }
 0x1b7   :  { %v1798_v27 = vadd.f32 %v1794_v26, %v1717_v24 }
 0x1b9   :  { %v1803_v28 = vadd.f32 %v2720_v25, %v1798_v27 }
 0x1bb   :  { %v1806_v29 = vsel %vm1804_vm0, %v1803_v28, -inf  ;;  %1805 = vst.msk [vmem:[#allocation8] sm:$0xff] %vm1804_vm0, %v1803_v28 }
 0x1bc   :  { %1807 = vmax.xlane.f32.xlu0 %v1806_v29  ;;  %1853 = dma.vmem_to_hbm [thread:$0]  %s1849_s11, 128, %s1851_s27, [#allocation4]  }
 0x1be   :  { %v1796_v30 = vpop.f32.mrf.mxu0 }
 0x22f   :  { %v1808_v33 = vpop.xlane.xlu0 %1807 }
 0x230   :  { %v1809_v34 = vsub.f32 %v1803_v28, %v1808_v33 }
 0x232   :  { %v1810_v35 = vmul.f32 1.442695, %v1809_v34 }
 0x234   :  { %2727 = vpow2.f32 %v1810_v35 }
 0x23a   :  { %v2728_v36 = vpop.eup %2727 }
 0x23b   :  { %v1812_v37 = vsel %vm1804_vm0, %v2728_v36, 0.0 }
 0x23c   :  { %1813 = vadd.xlane.f32.xlu0 %v1812_v37 }
 0x2af   :  { %v1814_v42 = vpop.xlane.xlu0 %1813 }
 0x2b0   :  { %2729 = vlog2.f32 %v1814_v42 }
 0x2b6   :  { %v2730_v45 = vpop.eup %2729 }
 0x2b7   :  { %v1816_v46 = vmul.f32 0.6931472, %v2730_v45 }
 0x2b9   :  { %v1817_v48 = vsub.f32 %v1809_v34, %v1816_v46 }
 0x2bb   :  { %v1827_v49 = vmul.f32 %v2537_v47, %v1817_v48 }
 0x2bd   :  { %v1828_v50 = vsel %vm1804_vm0, %v1827_v49, 0.0 }
 0x2be   :  { %1829 = vadd.xlane.f32.xlu1 %v1828_v50 }
 0x331   :  { %v1830_v51 = vpop.xlane.xlu1 %1829 }
 0x332   :  { %v1831_v52 = vsub.f32 0.0, %v1830_v51 }
 0x334   :  { %v1840_v53 = vmul.f32 %v2538_v41, %v1831_v52 }
 0x336   :  { %1842 = vst.msk [vmem:[%s3057_s13] sm:$0xff] %vm1841_vm3, %v1840_v53 }
 0x337   :  { %2831 = dma.done.wait [#allocation4], 128  }
 0x338   :  { %2832 = vsyncadd [#allocation4], 4294967168 }
 0x339   :  { %1862 = vsyncpa [#allocation3], 1 }
 0x33a   :  { %1863 = vsyncpa [#allocation6], 1 }
 0x33b   :  { %1864 = vsyncpa [#allocation4], 1 }

</bundles_post_ra>
